<compile_context>
chip_gen: v6e
topology: v6e:2x2x1
jax: 0.10.0
libtpu: 0.0.40
codegen_flags: <defaults>
</compile_context>

<pallas_src>
import functools

import jax
import jax.numpy as jnp
from jax.experimental import pallas as pl
from jax.experimental.pallas import tpu as pltpu


def _round_up(x: int, m: int) -> int:
    return -(-x // m) * m


def _round_down(x: int, m: int) -> int:
    return (x // m) * m


def _soft_entropy_kernel(x_ref, t_ref, out_ref, *, n_rows, tile_n, chunk_rows,
                         needs_mask, unroll):
    """Partial soft-CE sum for one (tile_n, C) row tile -> one output block."""
    num_chunks = tile_n // chunk_rows
    tile_start = pl.program_id(0) * tile_n

    def chunk_row_loss(r0):
        # Row sub-block: keeps live f32 temporaries small and independent of tile_n.
        x = x_ref[pl.ds(r0, chunk_rows), :].astype(jnp.float32)   # (chunk, C)
        t = t_ref[pl.ds(r0, chunk_rows), :].astype(jnp.float32)   # (chunk, C)

        # Numerically-stable log-sum-exp of inputs along the class (lane) axis.
        x_max = jnp.max(x, axis=1, keepdims=True)
        lse = jnp.log(jnp.sum(jnp.exp(x - x_max), axis=1, keepdims=True))

        # softmax(targets) folded in: sum_c p_c * x_c = (sum exp(t-tmax)*x) / sum exp(t-tmax)
        t_exp = jnp.exp(t - jnp.max(t, axis=1, keepdims=True))
        t_sum = jnp.sum(t_exp, axis=1, keepdims=True)
        tx = jnp.sum(t_exp * x, axis=1, keepdims=True)

        # per-row loss: sum_c -p_c * log_softmax(x)_c = x_max + lse - sum_c p_c x_c
        row_loss = x_max + lse - tx / t_sum                       # (chunk, 1)

        if needs_mask:
            # Edge-block garbage rows can produce NaN/Inf, but per-row reductions
            # keep them isolated; this select (NOT a multiply) zeroes them before
            # the accumulation.  Cost: two ops on a (chunk, 1) vector only.
            row_ids = (tile_start + r0
                       + jax.lax.broadcasted_iota(jnp.int32, (chunk_rows, 1), 0))
            row_loss = jnp.where(row_ids < n_rows, row_loss, 0.0)
        return row_loss

    if num_chunks == 1:
        acc = chunk_row_loss(0)
    else:
        def body(c, a):
            r0 = pl.multiple_of(c * chunk_rows, chunk_rows)
            return a + chunk_row_loss(r0)
        init = jnp.zeros((chunk_rows, 1), jnp.float32)
        if unroll:
            acc = jax.lax.fori_loop(0, num_chunks, body, init, unroll=True)
        else:
            acc = jax.lax.fori_loop(0, num_chunks, body, init)

    partial = jnp.sum(acc)
    # Lane-dense unmasked store of this tile's partial sum into its own block.
    out_ref[...] = jnp.broadcast_to(partial, out_ref.shape).astype(out_ref.dtype)


def soft_entropy(inputs: jax.Array, targets: jax.Array, *,
                 tile_n: int | None = None) -> jax.Array:
    """Pallas TPU implementation of SoftEntropy.forward for 2-D (N, C) logits."""
    assert inputs.ndim == 2 and inputs.shape == targets.shape
    N, C = inputs.shape
    isz_x = jnp.dtype(inputs.dtype).itemsize
    isz_t = jnp.dtype(targets.dtype).itemsize
    sub = 8 if min(isz_x, isz_t) >= 4 else 16      # sublane packing (16 for bf16)

    # Per-generation VMEM capacity (v5e/v6e: 128 MiB, v7x: 64 MiB per TC).
    try:
        info = pltpu.get_tpu_info()
        vmem_bytes = int(getattr(info, "vmem_capacity_bytes", 64 << 20))
    except Exception:  # pragma: no cover - conservative fallback
        vmem_bytes = 64 << 20

    n_pad = _round_up(N, sub)

    # Compute chunk: ~128K elements (~0.5 MiB per f32 temporary), sublane-aligned.
    chunk_rows = (128 << 10) // max(C, 1)
    chunk_rows = max(sub, min(_round_down(chunk_rows, sub), 4096))
    chunk_rows = min(chunk_rows, n_pad)

    row_stream_bytes = C * (isz_x + isz_t)          # HBM bytes read per row per step
    row_vmem_bytes = 2 * row_stream_bytes           # x2: double-buffered input blocks

    # Conservative total-VMEM budget: safe for v7x (64 MiB/TC) even if
    # get_tpu_info reports chip-level capacity; leaves headroom on v5e/v6e.
    vmem_budget = min(vmem_bytes, 48 << 20)
    temp_bytes = 6 * chunk_rows * C * 4             # f32 upcasts + exp/products + slack
    avail_for_inputs = max(vmem_budget - temp_bytes - (2 << 20),
                           row_vmem_bytes * chunk_rows)

    if tile_n is None:
        rows_vmem = avail_for_inputs // max(row_vmem_bytes, 1)
        rows_stream = (16 << 20) // max(row_stream_bytes, 1)   # ~16 MiB streamed / step
        rows = min(rows_vmem, rows_stream)
        rows = max(chunk_rows, _round_down(rows, chunk_rows))
        tile_n = min(rows, _round_up(N, chunk_rows))
    else:
        tile_n = max(sub, _round_up(tile_n, sub))
        chunk_rows = min(chunk_rows, tile_n)

    # Ensure chunk_rows divides tile_n (terminates: sub always divides tile_n).
    while tile_n % chunk_rows != 0:
        chunk_rows -= sub
    temp_bytes = 6 * chunk_rows * C * 4

    num_tiles = pl.cdiv(N, tile_n)
    needs_mask = (num_tiles * tile_n) != N
    num_chunks = tile_n // chunk_rows
    unroll = num_chunks <= 4

    # VMEM footprint: double-buffered inputs + per-chunk f32 temporaries + outputs.
    footprint = 2 * tile_n * row_stream_bytes + temp_bytes + 2 * (8 * 128 * 4)
    vmem_limit = int(min(vmem_bytes, max(footprint + (4 << 20), 32 << 20)))

    kernel = functools.partial(
        _soft_entropy_kernel, n_rows=N, tile_n=tile_n, chunk_rows=chunk_rows,
        needs_mask=needs_mask, unroll=unroll)

    partials = pl.pallas_call(
        kernel,
        out_shape=jax.ShapeDtypeStruct((num_tiles, 8, 128), jnp.float32),
        grid_spec=pltpu.PrefetchScalarGridSpec(
            num_scalar_prefetch=0,
            grid=(num_tiles,),
            in_specs=[
                pl.BlockSpec((tile_n, C), lambda i: (i, 0)),
                pl.BlockSpec((tile_n, C), lambda i: (i, 0)),
            ],
            out_specs=pl.BlockSpec((1, 8, 128), lambda i: (i, 0, 0)),
        ),
        compiler_params=pltpu.CompilerParams(
            dimension_semantics=("parallel",),     # independent per-tile partials
            vmem_limit_bytes=vmem_limit,
        ),
    )(inputs, targets)

    total = jnp.sum(partials[:, 0, 0])
    # mean over batch dim (dim 0), sum over classes == total_sum / N
    return (total / N).astype(jnp.float32)


def _soft_entropy_ref(inputs, targets):
    """Pure-JAX reference mirroring the PyTorch module."""
    log_probs = jax.nn.log_softmax(inputs.astype(jnp.float32), axis=1)
    p = jax.nn.softmax(targets.astype(jnp.float32), axis=1)
    return jnp.sum(jnp.mean(-p * log_probs, axis=0))


if __name__ == "__main__":
    key = jax.random.PRNGKey(0)
    k1, k2, k3, k4 = jax.random.split(key, 4)

    # Small shapes consistent with the module: (batch=16, num_classes=32).
    N, C = 16, 32
    inputs = jax.random.normal(k1, (N, C), dtype=jnp.float32)
    targets = jax.random.normal(k2, (N, C), dtype=jnp.float32)

    out = jax.block_until_ready(soft_entropy(inputs, targets))
    ref = _soft_entropy_ref(inputs, targets)
    assert jnp.allclose(out, ref, rtol=1e-5, atol=1e-5), (out, ref)

    # Ragged case: exercises multi-tile parallel grid + last-tile row masking.
    N2, C2 = 23, 48
    inputs2 = jax.random.normal(k3, (N2, C2), dtype=jnp.float32)
    targets2 = jax.random.normal(k4, (N2, C2), dtype=jnp.float32)
    out2 = jax.block_until_ready(soft_entropy(inputs2, targets2, tile_n=8))
    ref2 = _soft_entropy_ref(inputs2, targets2)
    assert jnp.allclose(out2, ref2, rtol=1e-5, atol=1e-5), (out2, ref2)

    print("KERNEL_OK")
</pallas_src>

<mosaic_0001>
module attributes {stable_mosaic.version = 11 : i64} {
  func.func @_soft_entropy_kernel(%arg0: i32, %arg1: memref<16x32xf32, #tpu.memory_space<vmem>>, %arg2: memref<16x32xf32, #tpu.memory_space<vmem>>, %arg3: memref<1x8x128xf32, #tpu.memory_space<vmem>>) attributes {dimension_semantics = [#tpu.dimension_semantics<parallel>], iteration_bounds = array<i64: 1>, scalar_prefetch = 0 : i64, scratch_operands = 0 : i64, tpu.core_type = #tpu.core_type<tc>, window_params = [{transform_indices = @transform_0, window_bounds = array<i64: 16, 32>}, {transform_indices = @transform_1, window_bounds = array<i64: 16, 32>}, {transform_indices = @transform_2, window_bounds = array<i64: 1, 8, 128>}]} {
    %c0 = arith.constant 0 : index
    %c0_0 = arith.constant 0 : index
    %0 = vector.load %arg1[%c0, %c0_0] : memref<16x32xf32, #tpu.memory_space<vmem>>, vector<16x32xf32>
    %c0_1 = arith.constant 0 : index
    %c0_2 = arith.constant 0 : index
    %1 = vector.load %arg2[%c0_1, %c0_2] : memref<16x32xf32, #tpu.memory_space<vmem>>, vector<16x32xf32>
    %cst = arith.constant dense<0xFF800000> : vector<16xf32>
    %2 = vector.multi_reduction <maximumf>, %0, %cst [1] : vector<16x32xf32> to vector<16xf32>
    %3 = vector.shape_cast %2 : vector<16xf32> to vector<16x1xf32>
    %4 = vector.broadcast %3 : vector<16x1xf32> to vector<16x32xf32>
    %5 = arith.subf %0, %4 : vector<16x32xf32>
    %6 = math.exp %5 : vector<16x32xf32>
    %cst_3 = arith.constant dense<0.000000e+00> : vector<16xf32>
    %7 = vector.multi_reduction <add>, %6, %cst_3 [1] : vector<16x32xf32> to vector<16xf32>
    %8 = vector.shape_cast %7 : vector<16xf32> to vector<16x1xf32>
    %9 = math.log %8 : vector<16x1xf32>
    %cst_4 = arith.constant dense<0xFF800000> : vector<16xf32>
    %10 = vector.multi_reduction <maximumf>, %1, %cst_4 [1] : vector<16x32xf32> to vector<16xf32>
    %11 = vector.shape_cast %10 : vector<16xf32> to vector<16x1xf32>
    %12 = vector.broadcast %11 : vector<16x1xf32> to vector<16x32xf32>
    %13 = arith.subf %1, %12 : vector<16x32xf32>
    %14 = math.exp %13 : vector<16x32xf32>
    %cst_5 = arith.constant dense<0.000000e+00> : vector<16xf32>
    %15 = vector.multi_reduction <add>, %14, %cst_5 [1] : vector<16x32xf32> to vector<16xf32>
    %16 = vector.shape_cast %15 : vector<16xf32> to vector<16x1xf32>
    %17 = arith.mulf %14, %0 : vector<16x32xf32>
    %cst_6 = arith.constant dense<0.000000e+00> : vector<16xf32>
    %18 = vector.multi_reduction <add>, %17, %cst_6 [1] : vector<16x32xf32> to vector<16xf32>
    %19 = vector.shape_cast %18 : vector<16xf32> to vector<16x1xf32>
    %20 = arith.addf %3, %9 : vector<16x1xf32>
    %21 = arith.divf %19, %16 : vector<16x1xf32>
    %22 = arith.subf %20, %21 : vector<16x1xf32>
    %23 = vector.shape_cast %22 : vector<16x1xf32> to vector<1x16x1xf32>
    %cst_7 = arith.constant dense<0.000000e+00> : vector<1xf32>
    %24 = vector.multi_reduction <add>, %23, %cst_7 [1, 2] : vector<1x16x1xf32> to vector<1xf32>
    %25 = vector.shape_cast %24 : vector<1xf32> to vector<1x1x1xf32>
    %26 = vector.extract %25[0, 0, 0] : f32 from vector<1x1x1xf32>
    %27 = vector.broadcast %26 : f32 to vector<1x8x128xf32>
    %c0_8 = arith.constant 0 : index
    %c0_9 = arith.constant 0 : index
    %c0_10 = arith.constant 0 : index
    %28 = vector.load %arg3[%c0_8, %c0_9, %c0_10] : memref<1x8x128xf32, #tpu.memory_space<vmem>>, vector<1x8x128xf32>
    tpu.vector_store %arg3[%c0_8, %c0_9, %c0_10], %27 {strides = array<i32>} : memref<1x8x128xf32, #tpu.memory_space<vmem>>, vector<1x8x128xf32>,
    return
  }
  func.func @transform_0(%arg0: i32) -> (i32, i32) {
    %c0_i32 = arith.constant 0 : i32
    %c0_i32_0 = arith.constant 0 : i32
    return %arg0, %c0_i32 : i32, i32
  }
  func.func @transform_1(%arg0: i32) -> (i32, i32) {
    %c0_i32 = arith.constant 0 : i32
    %c0_i32_0 = arith.constant 0 : i32
    return %arg0, %c0_i32 : i32, i32
  }
  func.func @transform_2(%arg0: i32) -> (i32, i32, i32) {
    %c0_i32 = arith.constant 0 : i32
    %c0_i32_0 = arith.constant 0 : i32
    %c0_i32_1 = arith.constant 0 : i32
    return %arg0, %c0_i32, %c0_i32_0 : i32, i32, i32
  }
}

</mosaic_0001>

<bundles_post_ra>
// kernel: tpu_custom_call.1
= control target key start
LH: loop header
LB: loop body
LE: loop exit
PB: predicated region body
PF: predicated region fallthrough
CT: control target
= control target key end

     0   :  { %7 = vsyncpa [#allocation3], 0  ;;  %s260_s0 = inlined_call_operand.hbm [shape: f32[16,32], index: 0, kind: input, shape index: {}]   ;;  %s261_s1 = inlined_call_operand.hbm [shape: f32[16,32], index: 1, kind: input, shape index: {}]   ;;  %s262_s2 = inlined_call_operand.hbm [shape: f32[1,8,128], index: 2, kind: output, shape index: {}]  }
   0x1   :  { %8 = vsyncpa [#allocation6], 0 }
   0x2   :  { %9 = vsyncpa [#allocation4], 0  ;;  %s221_s9 = smov [#allocation2]  }
   0x3   :  { %s15_s10 = sshll.u32 %s221_s9, 4  ;;  %s16_s10 = int_to_ptr.vmem [resolvable:$true] %s15_s10 }
   0x4   :  { %s163_s11 = scalar_lea.vmem %s16_s10, 256  ;;  %p168_p1 = scmp.lt.s32.totalorder %s16_s10, %s16_s10 }
   0x5   :  { %p164_p0 = scmp.ne.s32.totalorder %s16_s10, %s163_s11  ;;  %p169_p2 = scmp.lt.s32.totalorder %s163_s11, %s163_s11 }
   0x7   :  { %p170_p3 = por %p169_p2, %p168_p1 }
   0x9   :  { %p171_p4 = pnand %p170_p3, %p164_p0 }
   0xb   :  { %174 = shalt.err (!%p171_p4)
}
   0xc   :  { %s222_s12 = smov 128   ;;  %s223_s13 = smov 8  }
   0xd   :  { %21 = dma.hbm_to_vmem [thread:$0]  %s260_s0, 256, %s16_s10, [#allocation3], %s222_s12, %s222_s12, %s223_s13  }
   0xe   :  { %s224_s16 = smov [#allocation5]  }
   0xf   :  { %s27_s17 = sshll.u32 %s224_s16, 4  ;;  %s28_s17 = int_to_ptr.vmem [resolvable:$true] %s27_s17 }
  0x10   :  { %s183_s18 = scalar_lea.vmem %s28_s17, 256  ;;  %p188_p6 = scmp.lt.s32.totalorder %s28_s17, %s28_s17 }
  0x11   :  { %p184_p5 = scmp.ne.s32.totalorder %s28_s17, %s183_s18  ;;  %p189_p7 = scmp.lt.s32.totalorder %s183_s18, %s183_s18 }
  0x13   :  { %p190_p8 = por %p189_p7, %p188_p6 }
  0x15   :  { %p191_p9 = pnand %p190_p8, %p184_p5 }
  0x17   :  { %194 = shalt.err (!%p191_p9)
}
  0x18   :  { %33 = dma.hbm_to_vmem [thread:$0]  %s261_s1, 256, %s28_s17, [#allocation6], %s222_s12, %s222_s12, %s223_s13  }
  0x19   :  { %215 = dma.done.wait [#allocation3], 256  }
  0x1a   :  { %216 = vsyncadd [#allocation3], 4294967040 }
  0x1b   :  { %217 = dma.done.wait [#allocation6], 256  }
  0x1c   :  { %218 = vsyncadd [#allocation6], 4294967040  ;;  %vm44_vm0 = vcmask 261120   ;;  %v40_v0 = vld [vmem:[#allocation2] sm:$0xff]  ;;  %v42_v1 = vld [vmem:[#allocation5] sm:$0xff]  ;;  %vm101_vm1 = vcmask 7168  }
  0x1d   :  { %v41_v2 = vld [vmem:[#allocation2 + $0x8] sm:$0xff]  ;;  %v45_v3 = vsel %vm44_vm0, %v40_v0, -inf  ;;  %v67_v4 = vsel %vm44_vm0, %v42_v1, -inf  ;;  %v43_v5 = vld [vmem:[#allocation5 + $0x8] sm:$0xff]  ;;  %s225_s0 = smov [#allocation7]  }
  0x1e   :  { %46 = vmax.xlane.f32.xlu0 %v45_v3  ;;  %68 = vmax.xlane.f32.xlu1 %v67_v4  ;;  %v48_v6 = vsel %vm44_vm0, %v41_v2, -inf  ;;  %v70_v7 = vsel %vm44_vm0, %v43_v5, -inf  ;;  %s122_s1 = sshll.u32 %s225_s0, 4  ;;  %s123_s1 = int_to_ptr.vmem [resolvable:$true] %s122_s1 }
  0x1f   :  { %s195_s22 = scalar_lea.vmem %s123_s1, 128  ;;  %p200_p11 = scmp.lt.s32.totalorder %s123_s1, %s123_s1 }
  0x20   :  { %p196_p10 = scmp.ne.s32.totalorder %s123_s1, %s195_s22  ;;  %p201_p12 = scmp.lt.s32.totalorder %s195_s22, %s195_s22 }
  0x22   :  { %49 = vmax.xlane.f32.xlu0 %v48_v6  ;;  %71 = vmax.xlane.f32.xlu1 %v70_v7  ;;  %p202_p13 = por %p201_p12, %p200_p11 }
  0x24   :  { %p203_p0 = pnand %p202_p13, %p196_p10 }
  0xa7   :  { %v47_v8 = vpop.xlane.xlu0 %46  ;;  %v69_v9 = vpop.xlane.xlu1 %68 }
  0xa8   :  { %v51_v10 = vsub.f32 %v40_v0, %v47_v8  ;;  %v73_v11 = vsub.f32 %v42_v1, %v69_v9 }
  0xaa   :  { %v53_v12 = vmul.f32 1.442695, %v51_v10  ;;  %v75_v13 = vmul.f32 1.442695, %v73_v11 }
  0xab   :  { %v50_v14 = vpop.xlane.xlu0 %49  ;;  %v72_v15 = vpop.xlane.xlu1 %71 }
  0xac   :  { %139 = vpow2.f32 %v53_v12  ;;  %v52_v16 = vsub.f32 %v41_v2, %v50_v14  ;;  %v74_v17 = vsub.f32 %v43_v5, %v72_v15 }
  0xad   :  { %141 = vpow2.f32 %v75_v13 }
  0xae   :  { %v55_v18 = vmul.f32 1.442695, %v52_v16  ;;  %v77_v19 = vmul.f32 1.442695, %v74_v17 }
  0xb0   :  { %143 = vpow2.f32 %v55_v18 }
  0xb1   :  { %145 = vpow2.f32 %v77_v19 }
  0xb9   :  { %v140_v20 = vpop.eup %139 }
  0xba   :  { %v142_v21 = vpop.eup %141  ;;  %v57_v22 = vsel %vm44_vm0, %v140_v20, 0.0 }
  0xbb   :  { %58 = vadd.xlane.f32.xlu0 %v57_v22  ;;  %v79_v23 = vsel %vm44_vm0, %v142_v21, 0.0  ;;  %v85_v27 = vmul.f32 %v142_v21, %v40_v0 }
  0xbd   :  { %v144_v24 = vpop.eup %143  ;;  %v87_v29 = vsel %vm44_vm0, %v85_v27, 0.0 }
  0xbe   :  { %v146_v25 = vpop.eup %145  ;;  %v60_v26 = vsel %vm44_vm0, %v144_v24, 0.0 }
  0xbf   :  { %80 = vadd.xlane.f32.xlu0 %v79_v23  ;;  %61 = vadd.xlane.f32.xlu1 %v60_v26  ;;  %v82_v28 = vsel %vm44_vm0, %v146_v25, 0.0  ;;  %v86_v30 = vmul.f32 %v146_v25, %v41_v2 }
  0xc1   :  { %v90_v31 = vsel %vm44_vm0, %v86_v30, 0.0 }
  0xc3   :  { %88 = vadd.xlane.f32.xlu0 %v87_v29  ;;  %83 = vadd.xlane.f32.xlu1 %v82_v28 }
  0xc7   :  { %91 = vadd.xlane.f32.xlu1 %v90_v31 }
 0x144   :  { %v59_v32 = vpop.xlane.xlu0 %58 }
 0x145   :  { %147 = vlog2.f32 %v59_v32 }
 0x148   :  { %v62_v33 = vpop.xlane.xlu1 %61  ;;  %v81_v34 = vpop.xlane.xlu0 %80 }
 0x149   :  { %149 = vlog2.f32 %v62_v33 }
 0x14a   :  { %151 = vrcp.f32 %v81_v34 }
 0x14c   :  { %v84_v35 = vpop.xlane.xlu1 %83  ;;  %v89_v41 = vpop.xlane.xlu0 %88 }
 0x14d   :  { %153 = vrcp.f32 %v84_v35 }
 0x150   :  { %v92_v45 = vpop.xlane.xlu1 %91 }
 0x152   :  { %v148_v36 = vpop.eup %147 }
 0x153   :  { %v64_v37 = vmul.f32 0.6931472, %v148_v36 }
 0x155   :  { %v93_v43 = vadd.f32 %v64_v37, %v47_v8 }
 0x156   :  { %v150_v38 = vpop.eup %149 }
 0x157   :  { %v152_v39 = vpop.eup %151  ;;  %v66_v40 = vmul.f32 0.6931472, %v150_v38 }
 0x158   :  { %v96_v42 = vmul.f32 %v152_v39, %v89_v41 }
 0x159   :  { %v94_v47 = vadd.f32 %v66_v40, %v50_v14 }
 0x15a   :  { %v154_v44 = vpop.eup %153  ;;  %v99_v46 = vsub.f32 %v93_v43, %v96_v42 }
 0x15b   :  { %v98_v48 = vmul.f32 %v154_v44, %v92_v45 }
 0x15c   :  { %v102_v50 = vsel %vm101_vm1, %v99_v46, 0.0 }
 0x15d   :  { %v100_v49 = vsub.f32 %v94_v47, %v98_v48 }
 0x15f   :  { %v103_v51 = vsel %vm101_vm1, %v100_v49, 0.0 }
 0x160   :  { %v104_v52 = vadd.f32 %v103_v51, %v102_v50 }
 0x162   :  { %105 = vadd.xlane.f32.xlu0 %v104_v52 }
 0x1eb   :  { %v106_v53 = vpop.xlane.xlu0 %105 }
 0x1ec   :  { %v107_v54 = vrot.slane %v106_v53, 4 }
 0x1ee   :  { %v108_v55 = vadd.f32 %v107_v54, %v106_v53 }
 0x1f0   :  { %v109_v56 = vrot.slane %v108_v55, 2 }
 0x1f2   :  { %v110_v57 = vadd.f32 %v109_v56, %v108_v55 }
 0x1f4   :  { %v111_v58 = vrot.slane %v110_v57, 1 }
 0x1f6   :  { %v112_v59 = vadd.f32 %v111_v58, %v110_v57 }
 0x1f8   :  { %132 = vpush %v112_v59 }
 0x229   :  { %s133_s21 = spop %132 }
 0x22a   :  { %v114_v60 = vstv %s133_s21 }
 0x22b   :  { %115 = vst [vmem:[#allocation7] sm:$0xff] %v114_v60 }
 0x22c   :  { %206 = shalt.err (!%p203_p0)
}
 0x22d   :  { %125 = dma.vmem_to_hbm [thread:$0]  %s123_s1, 128, %s262_s2, [#allocation4]  }
 0x22e   :  { %219 = dma.done.wait [#allocation4], 128  }
 0x22f   :  { %220 = vsyncadd [#allocation4], 4294967168 }
 0x230   :  { %129 = vsyncpa [#allocation3], 1 }
 0x231   :  { %130 = vsyncpa [#allocation6], 1 }
 0x232   :  { %131 = vsyncpa [#allocation4], 1 }

</bundles_post_ra>
